<compile_context>
chip_gen: v7x
topology: tpu7x:2x2x1
jax: 0.10.0
libtpu: 0.0.40
codegen_flags: <defaults>
</compile_context>

<pallas_src>
import jax
import jax.numpy as jnp
from jax.experimental import pallas as pl
from jax.experimental.pallas import tpu as pltpu


GENRE_LABELS = (0, 1, 2, 3, 4)
CLASSIFICATION_TASKS = ("genre", "topic")
REGRESSION_TASKS = ("violence", "romantic", "sadness", "feelings",
                    "danceability", "energy")

_MAX_ROW_TILE = 512   # rows per grid step (multiple of 8; bounded VMEM on v7x)


def _round_up(x, m):
    return ((x + m - 1) // m) * m


# --------------------------------------------------------------------------
# Fused F1 kernel: all classification tasks in one launch.
#   grid = (num_tasks, num_row_tiles)
#   task axis "parallel" (megacore), row axis "arbitrary" (accumulated).
# --------------------------------------------------------------------------
def _make_f1_kernel(n_valid, tile_n):
    def kernel(logits_ref, truth_ref, out_ref, tp_acc, pc_acc, sup_acc):
        i = pl.program_id(1)

        @pl.when(i == 0)
        def _():
            tp_acc[...] = jnp.zeros_like(tp_acc)
            pc_acc[...] = jnp.zeros_like(pc_acc)
            sup_acc[...] = jnp.zeros_like(sup_acc)

        logits = logits_ref[...].astype(jnp.float32)   # upcast in-kernel (v5e)
        truth = truth_ref[...]                         # [tile_n, 1] int32
        _, c_pad = logits.shape

        class_ids = jax.lax.broadcasted_iota(jnp.int32, (tile_n, c_pad), 1)
        row_ids = jax.lax.broadcasted_iota(jnp.int32, (tile_n, 1), 0)
        valid = ((i * tile_n + row_ids) < n_valid).astype(jnp.float32)

        # argmax over classes, first-occurrence tie-break (matches np.argmax).
        # TODO(synk): rows of all-NaN logits yield no prediction (silently
        # dropped) rather than matching torch/np argmax NaN behavior.
        maxv = jnp.max(logits, axis=1, keepdims=True)
        pred_lab = jnp.min(jnp.where(logits == maxv, class_ids, c_pad),
                           axis=1, keepdims=True)

        pred_oh = (class_ids == pred_lab).astype(jnp.float32) * valid
        true_oh = (class_ids == truth).astype(jnp.float32) * valid

        # TODO(synk): for very large tile_n these sublane reductions could be
        # offloaded to the MXU (ones-vector matmul); at metric sizes it's noise.
        tp_acc[...] += jnp.sum(pred_oh * true_oh, axis=0, keepdims=True)
        pc_acc[...] += jnp.sum(pred_oh, axis=0, keepdims=True)   # tp + fp
        sup_acc[...] += jnp.sum(true_oh, axis=0, keepdims=True)  # tp + fn

        @pl.when(i == pl.num_programs(1) - 1)
        def _():
            tp = tp_acc[...]
            denom = pc_acc[...] + sup_acc[...]          # == 2*tp + fp + fn
            f1 = jnp.where(denom == 0.0, 1.0,           # zero_division=1
                           2.0 * tp / jnp.where(denom == 0.0, 1.0, denom))
            out_ref[0:1, :] = f1
            out_ref[1:2, :] = sup_acc[...]

    return kernel


def fused_f1(logits_list, truth_list, min_classes=1):
    """One pallas_call computing per-class F1 + support for several
    classification heads that share batch size N.
    Returns (f1 [T, C_pad], support [T, C_pad]) as float32."""
    n = int(logits_list[0].shape[0])
    c_pad = max(max(int(l.shape[1]) for l in logits_list), min_classes)
    t_cls = len(logits_list)

    tile_n = min(_MAX_ROW_TILE, _round_up(n, 8))
    n_pad = _round_up(n, tile_n)

    dtype = jnp.result_type(*[l.dtype for l in logits_list])
    if not jnp.issubdtype(dtype, jnp.floating):
        dtype = jnp.float32
    neg = float(jnp.finfo(dtype).min)   # padded class columns never win argmax

    def prep_logits(l):
        l = l.astype(dtype)   # no-op when all heads share a dtype
        return jnp.pad(l, ((0, n_pad - n), (0, c_pad - int(l.shape[1]))),
                       constant_values=neg)

    def prep_truth(t):
        t = t.reshape(n, 1).astype(jnp.int32)
        return jnp.pad(t, ((0, n_pad - n), (0, 0)), constant_values=-1)

    logits_stacked = jnp.stack([prep_logits(l) for l in logits_list])  # [T,Np,Cp]
    truth_stacked = jnp.stack([prep_truth(t) for t in truth_list])     # [T,Np,1]

    bytes_accessed = (int(logits_stacked.size) * logits_stacked.dtype.itemsize
                      + int(truth_stacked.size) * 4 + t_cls * 2 * c_pad * 4)
    flops = 12 * t_cls * n_pad * c_pad

    out = pl.pallas_call(
        _make_f1_kernel(n, tile_n),
        out_shape=jax.ShapeDtypeStruct((t_cls, 2, c_pad), jnp.float32),
        grid=(t_cls, n_pad // tile_n),
        in_specs=[
            pl.BlockSpec((None, tile_n, c_pad), lambda t, i: (t, i, 0)),
            pl.BlockSpec((None, tile_n, 1), lambda t, i: (t, i, 0)),
        ],
        out_specs=pl.BlockSpec((None, 2, c_pad), lambda t, i: (t, 0, 0)),
        scratch_shapes=[
            pltpu.VMEM((1, c_pad), jnp.float32),   # tp
            pltpu.VMEM((1, c_pad), jnp.float32),   # tp + fp  (pred count)
            pltpu.VMEM((1, c_pad), jnp.float32),   # tp + fn  (support)
        ],
        compiler_params=pltpu.CompilerParams(
            dimension_semantics=("parallel", "arbitrary")),
        cost_estimate=pl.CostEstimate(
            flops=flops, transcendentals=0, bytes_accessed=bytes_accessed),
    )(logits_stacked, truth_stacked)

    return out[:, 0, :], out[:, 1, :]


# --------------------------------------------------------------------------
# Fused MSE kernel: all same-sized regression tasks in one launch.
#   grid = (num_tasks, num_row_tiles); lane-dense [rows, 128] layout.
# --------------------------------------------------------------------------
def _make_mse_kernel(inv_count):
    def kernel(pred_ref, truth_ref, out_ref, acc_ref):
        i = pl.program_id(1)

        @pl.when(i == 0)
        def _():
            acc_ref[...] = jnp.zeros_like(acc_ref)

        d = pred_ref[...].astype(jnp.float32) - truth_ref[...].astype(jnp.float32)
        acc_ref[...] += jnp.sum(jnp.sum(d * d, axis=1, keepdims=True),
                                axis=0, keepdims=True)

        @pl.when(i == pl.num_programs(1) - 1)
        def _():
            out_ref[...] = acc_ref[...] * inv_count

    return kernel


def fused_mse(pred_list, truth_list):
    """One pallas_call computing mean-squared-error for several regression
    heads that share the same element count."""
    e = int(pred_list[0].size)
    t_reg = len(pred_list)

    r = -(-e // 128)                      # ceil(e / 128) rows of 128 lanes
    if r <= _MAX_ROW_TILE:
        tile_r, r_pad = r, r
    else:
        tile_r = _MAX_ROW_TILE
        r_pad = _round_up(r, _MAX_ROW_TILE)
    pad_e = r_pad * 128 - e

    def prep(x):
        flat = x.reshape(-1)              # native dtype; upcast in-kernel
        if pad_e:
            flat = jnp.pad(flat, (0, pad_e))   # zero pad -> zero sq. error
        return flat.reshape(r_pad, 128)

    pred_stacked = jnp.stack([prep(p) for p in pred_list])    # [T, r_pad, 128]
    truth_stacked = jnp.stack([prep(t) for t in truth_list])  # [T, r_pad, 128]

    bytes_accessed = (int(pred_stacked.size) * pred_stacked.dtype.itemsize
                      + int(truth_stacked.size) * truth_stacked.dtype.itemsize
                      + t_reg * 4)
    flops = 3 * t_reg * r_pad * 128

    out = pl.pallas_call(
        _make_mse_kernel(1.0 / float(e)),
        out_shape=jax.ShapeDtypeStruct((t_reg, 1, 1), jnp.float32),
        grid=(t_reg, r_pad // tile_r),
        in_specs=[
            pl.BlockSpec((None, tile_r, 128), lambda t, i: (t, i, 0)),
            pl.BlockSpec((None, tile_r, 128), lambda t, i: (t, i, 0)),
        ],
        out_specs=pl.BlockSpec((None, 1, 1), lambda t, i: (t, 0, 0)),
        scratch_shapes=[pltpu.VMEM((1, 1), jnp.float32)],
        compiler_params=pltpu.CompilerParams(
            dimension_semantics=("parallel", "arbitrary")),
        cost_estimate=pl.CostEstimate(
            flops=flops, transcendentals=0, bytes_accessed=bytes_accessed),
    )(pred_stacked, truth_stacked)

    return out[:, 0, 0]


# --------------------------------------------------------------------------
# Metrics container (mirrors the PyTorch Metrics module)
# --------------------------------------------------------------------------
class Metrics:
    """Per-task metric dispatcher.  No learnable parameters."""

    def __init__(self, tasks):
        self.tasks = tasks

    def __call__(self, prediction, truth):
        metric_dict = {}

        cls_tasks = [t for t in self.tasks if t in CLASSIFICATION_TASKS]
        reg_tasks = [t for t in self.tasks if t in REGRESSION_TASKS]
        # TODO(synk): unknown task names return None in the reference
        # (get_metric falls through); they are simply skipped here.

        # --- classification: one fused launch per batch size ---------------
        cls_groups = {}
        for t in cls_tasks:
            cls_groups.setdefault(int(prediction[t].shape[0]), []).append(t)
        for tlist in cls_groups.values():
            min_c = (max(GENRE_LABELS) + 1) if "genre" in tlist else 1
            f1_all, sup_all = fused_f1([prediction[t] for t in tlist],
                                       [truth[t] for t in tlist],
                                       min_classes=min_c)
            for idx, t in enumerate(tlist):
                if t == "genre":
                    # f1_score(..., labels=[0..4], average=None)
                    metric_dict[t] = f1_all[idx, jnp.asarray(GENRE_LABELS)]
                else:
                    # f1_score(..., average='weighted'): support-weighted mean
                    sup = sup_all[idx]
                    metric_dict[t] = jnp.sum(f1_all[idx] * sup) / jnp.sum(sup)

        # --- regression: one fused launch per element count ----------------
        reg_groups = {}
        for t in reg_tasks:
            reg_groups.setdefault(int(prediction[t].size), []).append(t)
        for tlist in reg_groups.values():
            mses = fused_mse([prediction[t] for t in tlist],
                             [truth[t] for t in tlist])
            for idx, t in enumerate(tlist):
                metric_dict[t] = mses[idx]

        return metric_dict


if __name__ == "__main__":
    key = jax.random.PRNGKey(0)
    k1, k2, k3, k4, k5, k6, k7, k8 = jax.random.split(key, 8)

    N = 8
    tasks = ["genre", "topic", "violence", "energy"]

    prediction = {
        "genre": jax.random.normal(k1, (N, 5), jnp.float32),    # 5 genre classes
        "topic": jax.random.normal(k2, (N, 8), jnp.float32),    # 8 topic classes
        "violence": jax.random.normal(k3, (N, 1), jnp.float32),
        "energy": jax.random.normal(k4, (N, 1), jnp.float32),
    }
    truth = {
        "genre": jax.random.randint(k5, (N,), 0, 5, jnp.int32),
        "topic": jax.random.randint(k6, (N,), 0, 8, jnp.int32),
        "violence": jax.random.uniform(k7, (N, 1), dtype=jnp.float32),
        "energy": jax.random.uniform(k8, (N, 1), dtype=jnp.float32),
    }

    metrics = Metrics(tasks)
    result = metrics(prediction, truth)
    jax.block_until_ready(result)
    print("KERNEL_OK")
</pallas_src>

<mosaic_0001>
module attributes {stable_mosaic.version = 11 : i64} {
  func.func @kernel(%arg0: i32, %arg1: i32, %arg2: memref<1x8x8xf32, #tpu.memory_space<vmem>>, %arg3: memref<1x8x1xi32, #tpu.memory_space<vmem>>, %arg4: memref<1x2x8xf32, #tpu.memory_space<vmem>>, %arg5: memref<1x8xf32, #tpu.memory_space<vmem>>, %arg6: memref<1x8xf32, #tpu.memory_space<vmem>>, %arg7: memref<1x8xf32, #tpu.memory_space<vmem>>) attributes {dimension_semantics = [#tpu.dimension_semantics<parallel>, #tpu.dimension_semantics<arbitrary>], iteration_bounds = array<i64: 2, 1>, scalar_prefetch = 0 : i64, scratch_operands = 3 : i64, tpu.core_type = #tpu.core_type<tc>, window_params = [{transform_indices = @transform_0, window_bounds = array<i64: 1, 8, 8>}, {transform_indices = @transform_1, window_bounds = array<i64: 1, 8, 1>}, {transform_indices = @transform_2, window_bounds = array<i64: 1, 2, 8>}]} {
    %c0_i32 = arith.constant 0 : i32
    %0 = arith.cmpi eq, %arg1, %c0_i32 : i32
    %1 = arith.extui %0 : i1 to i32
    %c0_i32_0 = arith.constant 0 : i32
    %2 = arith.cmpi ne, %1, %c0_i32_0 : i32
    scf.if %2 {
      %cst_26 = arith.constant 0.000000e+00 : f32
      %55 = vector.broadcast %cst_26 : f32 to vector<1x8xf32>
      %c0_27 = arith.constant 0 : index
      %c0_28 = arith.constant 0 : index
      %56 = vector.load %arg5[%c0_27, %c0_28] : memref<1x8xf32, #tpu.memory_space<vmem>>, vector<1x8xf32>
      tpu.vector_store %arg5[%c0_27, %c0_28], %55 {strides = array<i32>} : memref<1x8xf32, #tpu.memory_space<vmem>>, vector<1x8xf32>,
      %cst_29 = arith.constant 0.000000e+00 : f32
      %57 = vector.broadcast %cst_29 : f32 to vector<1x8xf32>
      %c0_30 = arith.constant 0 : index
      %c0_31 = arith.constant 0 : index
      %58 = vector.load %arg6[%c0_30, %c0_31] : memref<1x8xf32, #tpu.memory_space<vmem>>, vector<1x8xf32>
      tpu.vector_store %arg6[%c0_30, %c0_31], %57 {strides = array<i32>} : memref<1x8xf32, #tpu.memory_space<vmem>>, vector<1x8xf32>,
      %cst_32 = arith.constant 0.000000e+00 : f32
      %59 = vector.broadcast %cst_32 : f32 to vector<1x8xf32>
      %c0_33 = arith.constant 0 : index
      %c0_34 = arith.constant 0 : index
      %60 = vector.load %arg7[%c0_33, %c0_34] : memref<1x8xf32, #tpu.memory_space<vmem>>, vector<1x8xf32>
      tpu.vector_store %arg7[%c0_33, %c0_34], %59 {strides = array<i32>} : memref<1x8xf32, #tpu.memory_space<vmem>>, vector<1x8xf32>,
    } else {
    }
    %c0 = arith.constant 0 : index
    %c0_1 = arith.constant 0 : index
    %c0_2 = arith.constant 0 : index
    %3 = vector.load %arg2[%c0, %c0_1, %c0_2] : memref<1x8x8xf32, #tpu.memory_space<vmem>>, vector<1x8x8xf32>
    %4 = vector.shape_cast %3 : vector<1x8x8xf32> to vector<8x8xf32>
    %c0_3 = arith.constant 0 : index
    %c0_4 = arith.constant 0 : index
    %c0_5 = arith.constant 0 : index
    %5 = vector.load %arg3[%c0_3, %c0_4, %c0_5] : memref<1x8x1xi32, #tpu.memory_space<vmem>>, vector<1x8x1xi32>
    %6 = vector.shape_cast %5 : vector<1x8x1xi32> to vector<8x1xi32>
    %7 = tpu.iota {dimensions = array<i32: 1>} : vector<8x8xi32>
    %8 = tpu.iota {dimensions = array<i32: 0>} : vector<8x1xi32>
    %c8_i32 = arith.constant 8 : i32
    %9 = arith.muli %arg1, %c8_i32 : i32
    %10 = vector.broadcast %9 : i32 to vector<8x1xi32>
    %11 = arith.addi %10, %8 : vector<8x1xi32>
    %c8_i32_6 = arith.constant 8 : i32
    %12 = vector.broadcast %c8_i32_6 : i32 to vector<8x1xi32>
    %13 = arith.cmpi slt, %11, %12 : vector<8x1xi32>
    %14 = arith.extui %13 : vector<8x1xi1> to vector<8x1xi32>
    %15 = arith.sitofp %14 : vector<8x1xi32> to vector<8x1xf32>
    %cst = arith.constant dense<0xFF800000> : vector<8xf32>
    %16 = vector.multi_reduction <maximumf>, %4, %cst [1] : vector<8x8xf32> to vector<8xf32>
    %17 = vector.shape_cast %16 : vector<8xf32> to vector<8x1xf32>
    %18 = vector.broadcast %17 : vector<8x1xf32> to vector<8x8xf32>
    %19 = arith.cmpf oeq, %4, %18 : vector<8x8xf32>
    %c8_i32_7 = arith.constant 8 : i32
    %20 = vector.broadcast %c8_i32_7 : i32 to vector<8x8xi32>
    %21 = arith.select %19, %7, %20 : vector<8x8xi1>, vector<8x8xi32>
    %cst_8 = arith.constant dense<2147483647> : vector<8xi32>
    %22 = vector.multi_reduction <minsi>, %21, %cst_8 [1] : vector<8x8xi32> to vector<8xi32>
    %23 = vector.shape_cast %22 : vector<8xi32> to vector<8x1xi32>
    %24 = vector.broadcast %23 : vector<8x1xi32> to vector<8x8xi32>
    %25 = arith.cmpi eq, %7, %24 : vector<8x8xi32>
    %26 = arith.extui %25 : vector<8x8xi1> to vector<8x8xi32>
    %27 = arith.sitofp %26 : vector<8x8xi32> to vector<8x8xf32>
    %28 = vector.broadcast %15 : vector<8x1xf32> to vector<8x8xf32>
    %29 = arith.mulf %27, %28 : vector<8x8xf32>
    %30 = vector.broadcast %6 : vector<8x1xi32> to vector<8x8xi32>
    %31 = arith.cmpi eq, %7, %30 : vector<8x8xi32>
    %32 = arith.extui %31 : vector<8x8xi1> to vector<8x8xi32>
    %33 = arith.sitofp %32 : vector<8x8xi32> to vector<8x8xf32>
    %34 = vector.broadcast %15 : vector<8x1xf32> to vector<8x8xf32>
    %35 = arith.mulf %33, %34 : vector<8x8xf32>
    %c0_9 = arith.constant 0 : index
    %c0_10 = arith.constant 0 : index
    %36 = vector.load %arg5[%c0_9, %c0_10] : memref<1x8xf32, #tpu.memory_space<vmem>>, vector<1x8xf32>
    %37 = arith.mulf %29, %35 : vector<8x8xf32>
    %cst_11 = arith.constant dense<0.000000e+00> : vector<8xf32>
    %38 = vector.multi_reduction <add>, %37, %cst_11 [0] : vector<8x8xf32> to vector<8xf32>
    %39 = vector.shape_cast %38 : vector<8xf32> to vector<1x8xf32>
    %40 = arith.addf %36, %39 : vector<1x8xf32>
    %c0_12 = arith.constant 0 : index
    %c0_13 = arith.constant 0 : index
    %41 = vector.load %arg5[%c0_12, %c0_13] : memref<1x8xf32, #tpu.memory_space<vmem>>, vector<1x8xf32>
    tpu.vector_store %arg5[%c0_12, %c0_13], %40 {strides = array<i32>} : memref<1x8xf32, #tpu.memory_space<vmem>>, vector<1x8xf32>,
    %c0_14 = arith.constant 0 : index
    %c0_15 = arith.constant 0 : index
    %42 = vector.load %arg6[%c0_14, %c0_15] : memref<1x8xf32, #tpu.memory_space<vmem>>, vector<1x8xf32>
    %cst_16 = arith.constant dense<0.000000e+00> : vector<8xf32>
    %43 = vector.multi_reduction <add>, %29, %cst_16 [0] : vector<8x8xf32> to vector<8xf32>
    %44 = vector.shape_cast %43 : vector<8xf32> to vector<1x8xf32>
    %45 = arith.addf %42, %44 : vector<1x8xf32>
    %c0_17 = arith.constant 0 : index
    %c0_18 = arith.constant 0 : index
    %46 = vector.load %arg6[%c0_17, %c0_18] : memref<1x8xf32, #tpu.memory_space<vmem>>, vector<1x8xf32>
    tpu.vector_store %arg6[%c0_17, %c0_18], %45 {strides = array<i32>} : memref<1x8xf32, #tpu.memory_space<vmem>>, vector<1x8xf32>,
    %c0_19 = arith.constant 0 : index
    %c0_20 = arith.constant 0 : index
    %47 = vector.load %arg7[%c0_19, %c0_20] : memref<1x8xf32, #tpu.memory_space<vmem>>, vector<1x8xf32>
    %cst_21 = arith.constant dense<0.000000e+00> : vector<8xf32>
    %48 = vector.multi_reduction <add>, %35, %cst_21 [0] : vector<8x8xf32> to vector<8xf32>
    %49 = vector.shape_cast %48 : vector<8xf32> to vector<1x8xf32>
    %50 = arith.addf %47, %49 : vector<1x8xf32>
    %c0_22 = arith.constant 0 : index
    %c0_23 = arith.constant 0 : index
    %51 = vector.load %arg7[%c0_22, %c0_23] : memref<1x8xf32, #tpu.memory_space<vmem>>, vector<1x8xf32>
    tpu.vector_store %arg7[%c0_22, %c0_23], %50 {strides = array<i32>} : memref<1x8xf32, #tpu.memory_space<vmem>>, vector<1x8xf32>,
    %c0_i32_24 = arith.constant 0 : i32
    %52 = arith.cmpi eq, %arg1, %c0_i32_24 : i32
    %53 = arith.extui %52 : i1 to i32
    %c0_i32_25 = arith.constant 0 : i32
    %54 = arith.cmpi ne, %53, %c0_i32_25 : i32
    scf.if %54 {
      %c0_26 = arith.constant 0 : index
      %c0_27 = arith.constant 0 : index
      %55 = vector.load %arg5[%c0_26, %c0_27] : memref<1x8xf32, #tpu.memory_space<vmem>>, vector<1x8xf32>
      %c0_28 = arith.constant 0 : index
      %c0_29 = arith.constant 0 : index
      %56 = vector.load %arg6[%c0_28, %c0_29] : memref<1x8xf32, #tpu.memory_space<vmem>>, vector<1x8xf32>
      %c0_30 = arith.constant 0 : index
      %c0_31 = arith.constant 0 : index
      %57 = vector.load %arg7[%c0_30, %c0_31] : memref<1x8xf32, #tpu.memory_space<vmem>>, vector<1x8xf32>
      %58 = arith.addf %56, %57 : vector<1x8xf32>
      %cst_32 = arith.constant 0.000000e+00 : f32
      %59 = vector.broadcast %cst_32 : f32 to vector<1x8xf32>
      %60 = arith.cmpf oeq, %58, %59 : vector<1x8xf32>
      %cst_33 = arith.constant 2.000000e+00 : f32
      %61 = vector.broadcast %cst_33 : f32 to vector<1x8xf32>
      %62 = arith.mulf %61, %55 : vector<1x8xf32>
      %cst_34 = arith.constant 0.000000e+00 : f32
      %63 = vector.broadcast %cst_34 : f32 to vector<1x8xf32>
      %64 = arith.cmpf oeq, %58, %63 : vector<1x8xf32>
      %cst_35 = arith.constant 1.000000e+00 : f32
      %65 = vector.broadcast %cst_35 : f32 to vector<1x8xf32>
      %66 = arith.select %64, %65, %58 : vector<1x8xi1>, vector<1x8xf32>
      %67 = arith.divf %62, %66 : vector<1x8xf32>
      %cst_36 = arith.constant 1.000000e+00 : f32
      %68 = vector.broadcast %cst_36 : f32 to vector<1x8xf32>
      %69 = arith.select %60, %68, %67 : vector<1x8xi1>, vector<1x8xf32>
      %c0_37 = arith.constant 0 : index
      %c0_38 = arith.constant 0 : index
      %c0_39 = arith.constant 0 : index
      %70 = vector.load %arg4[%c0_37, %c0_38, %c0_39] : memref<1x2x8xf32, #tpu.memory_space<vmem>>, vector<1x1x8xf32>
      %71 = vector.shape_cast %70 : vector<1x1x8xf32> to vector<1x8xf32>
      %72 = vector.shape_cast %69 : vector<1x8xf32> to vector<1x1x8xf32>
      tpu.vector_store %arg4[%c0_37, %c0_38, %c0_39], %72 {strides = array<i32>} : memref<1x2x8xf32, #tpu.memory_space<vmem>>, vector<1x1x8xf32>,
      %c0_40 = arith.constant 0 : index
      %c0_41 = arith.constant 0 : index
      %73 = vector.load %arg7[%c0_40, %c0_41] : memref<1x8xf32, #tpu.memory_space<vmem>>, vector<1x8xf32>
      %c0_42 = arith.constant 0 : index
      %c1 = arith.constant 1 : index
      %c0_43 = arith.constant 0 : index
      %74 = vector.load %arg4[%c0_42, %c1, %c0_43] : memref<1x2x8xf32, #tpu.memory_space<vmem>>, vector<1x1x8xf32>
      %75 = vector.shape_cast %74 : vector<1x1x8xf32> to vector<1x8xf32>
      %76 = vector.shape_cast %73 : vector<1x8xf32> to vector<1x1x8xf32>
      tpu.vector_store %arg4[%c0_42, %c1, %c0_43], %76 {strides = array<i32>} : memref<1x2x8xf32, #tpu.memory_space<vmem>>, vector<1x1x8xf32>,
    } else {
    }
    return
  }
  func.func @transform_0(%arg0: i32, %arg1: i32) -> (i32, i32, i32) {
    %c0_i32 = arith.constant 0 : i32
    %c0_i32_0 = arith.constant 0 : i32
    return %arg0, %arg1, %c0_i32 : i32, i32, i32
  }
  func.func @transform_1(%arg0: i32, %arg1: i32) -> (i32, i32, i32) {
    %c0_i32 = arith.constant 0 : i32
    %c0_i32_0 = arith.constant 0 : i32
    return %arg0, %arg1, %c0_i32 : i32, i32, i32
  }
  func.func @transform_2(%arg0: i32, %arg1: i32) -> (i32, i32, i32) {
    %c0_i32 = arith.constant 0 : i32
    %c0_i32_0 = arith.constant 0 : i32
    %c0_i32_1 = arith.constant 0 : i32
    return %arg0, %c0_i32, %c0_i32_0 : i32, i32, i32
  }
}

</mosaic_0001>

<bundles_post_ra>
// kernel: tpu_custom_call.1
= control target key start
LH: loop header
LB: loop body
LE: loop exit
PB: predicated region body
PF: predicated region fallthrough
CT: control target
= control target key end

     0   :  { %7 = vsyncpa [#allocation6], 0  ;;  %s690_s0 = inlined_call_operand.vmem [shape: f32[2,8,8], index: 0, kind: input, shape index: {}]   ;;  %s691_s1 = inlined_call_operand.vmem [shape: s32[2,8,1], index: 1, kind: input, shape index: {}]   ;;  %s692_s2 = inlined_call_operand.hbm [shape: f32[2,2,8], index: 2, kind: output, shape index: {}]  }
   0x1   :  { %9 = vsyncpa [#allocation6 + $0x1], 0  ;;  %s562_s9 = smov 0   ;;  %s564_s10 = smov 0  }
   0x2   :  { %s566_s11 = smov 0   ;;  %s568_s12 = smov 0  }
   0x3   :  { %s570_s13 = smov 0   ;;  %s572_s14 = smov 0  }
   0x4 LB: > { %s389_s15 = sadd.s32 4294967295, %s542_s14   ;;  %s390_s16 = sadd.s32 4294967294, %s542_s14   ;;  %s542_s14 = sphi %s572_s14, %s15_s14   ;;  %s538_s13 = sphi %s570_s13, %s699_s13   ;;  %s534_s12 = sphi %s568_s12, %s698_s12   ;;  %s530_s11 = sphi %s566_s11, %s697_s11   ;;  %s526_s10 = sphi %s564_s10, %s696_s10   ;;  %s522_s9 = sphi %s562_s9, %s695_s9  }
   0x5   : > { %s27_s17 = sadd.s32 1, %s538_s13  ;;  %s90_s18 = sadd.s32 1, %s530_s11 }
   0x6   : > { %p29_p0 = scmp.ge.s32.totalorder %s27_s17, 2  ;;  %p100_p1 = scmp.ne.s32.totalorder %s530_s11, %s526_s10 }
   0x7   : > { %p101_p2 = scmp.eq.s32.totalorder %s389_s15, 1  ;;  %p106_p3 = scmp.ne.s32.totalorder %s526_s10, %s522_s9 }
   0x8   : > { %s701_s17 = smov (%p29_p0, %s27_s17), 0  ;;  %p107_p5 = scmp.eq.s32.totalorder %s390_s16, 1 }
   0x9   : > { %p602_p4 = por %p101_p2, %p100_p1  ;;  %s87_s20 = ssub.s32 %s538_s13, %s701_s17 }
   0xa   : > { %p393_p6 = scmp.ge.s32.totalorder %s542_s14, 1  ;;  %p88_p7 = scmp.eq.s32.totalorder %s87_s20, 0 }
   0xb   : > { %p609_p8 = por %p107_p5, %p106_p3  ;;  %p145_p9 = scmp.lt.s32.totalorder %s542_s14, 3 }
   0xc   : > { %s615_s22 = scalar_select %p88_p7, %s530_s11, %s90_s18  }
   0xd   : > { %p146_p10 = pnand %p393_p6, %p145_p9 }
   0xe   : > { %p176_p11 = scmp.lt.s32.totalorder (!%p146_p10), %s534_s12, 1  ;;  %vm210_vm0 = vcmask (!%p146_p10), 64512   ;;  %v200_v2 = vlaneseq (!%p146_p10)  ;;  %v544_v9 = vmov (!%p146_p10), 0   ;;  %vm194_vm3 = vcmask (!%p146_p10), 57344   ;;  %s173_s3 = sand.u32 (!%p146_p10), 1, %s526_s10  }
   0xf   : > { %149 = sbr.rel (%p146_p10) target bundleno = 524 (0x20c), region = 28  ;;  %460 = vset.pattern.permute.xlu1 (!%p146_p10), %v544_v9  ;;  %461 = vset.pattern.permute.xlu0 (!%p146_p10), %v544_v9  ;;  %v545_v15 = vmov (!%p146_p10), 0.0   ;;  %s394_s4 = sshll.u32 (!%p146_p10), %s173_s3, 1 }
  0x10   : > { %v201_v3 = vand.u32 (!%p146_p10), 127, %v200_v2  ;;  %195 = vst.msk [vmem:[#allocation2] sm:$0x1] (!%p146_p10), %vm194_vm3, %v545_v15  ;;  %196 = vst.msk [vmem:[#allocation3] sm:$0x1] (!%p146_p10), %vm194_vm3, %v545_v15  ;;  %s175_s5 = scalar_lea.vmem (!%p146_p10), [#allocation5], %s394_s4 }
  0x11   : > { %197 = vst.msk [vmem:[#allocation4] sm:$0x1] (!%p146_p10), %vm194_vm3, %v545_v15  ;;  %s400_s6 = sshll.u32 (!%p146_p10), %s534_s12, 5  ;;  %s304_s7 = sshll.u32 (!%p146_p10), %s175_s5, 4  ;;  %s644_s7 = int_to_ptr.vmem [resolvable:$true] %s304_s7 }
  0x12   : > { %s642_s16 = scalar_lea.hbm (!%p146_p10), %s692_s2, %s400_s6  ;;  %s291_s18 = scalar_lea.sflag (!%p146_p10), [#allocation6], %s173_s3 }
  0x13   : > { %s464_s20 = scalar_lea.vmem (!%p146_p10), %s644_s7, 32 }
  0x14   : > { %p465_p12 = scmp.ne.s32.totalorder (!%p146_p10), %s644_s7, %s464_s20 }
  0x16   : > { %s177_s23 = scalar_select %p176_p11, %s534_s12, 1 }
  0x17   : > { %v254_v42 = vld [vmem:[#allocation3] sm:$0x1]  ;;  %v242_v47 = vld [vmem:[#allocation2] sm:$0x1]  ;;  %p466_p13 = pnand %p465_p12, %p602_p4  ;;  %s546_s12 = smov [#allocation5]  }
  0x18   : > { %s395_s24 = sshll.u32 %s177_s23, 3  ;;  %v264_v43 = vld [vmem:[#allocation4] sm:$0x1]  ;;  %s468_s23 = sshll.u32 %s546_s12, 4  ;;  %s469_s23 = int_to_ptr.vmem [resolvable:$false] %s468_s23 }
  0x19   : > { %s182_s27 = scalar_lea.vmem %s690_s0, %s395_s24  ;;  %s189_s30 = scalar_lea.vmem %s691_s1, %s395_s24 }
  0x1a   : > { %v198_v0 = vld [vmem:[%s182_s27] sm:$0xff]  ;;  %p467_p0 = pneg %p466_p13  ;;  %s470_s24 = scalar_lea.vmem %s469_s23, 64 }
  0x1b   : > { %v211_v1 = vsel %vm210_vm0, %v198_v0, -inf  ;;  %v199_v14 = vld [vmem:[%s189_s30] sm:$0xff]  ;;  %p471_p1 = scmp.lt.s32.totalorder %s644_s7, %s469_s23  ;;  %p472_p2 = scmp.lt.s32.totalorder %s470_s24, %s464_s20 }
  0x1c   : > { %212 = vmax.xlane.f32.xlu0 %v211_v1 }
  0x1d   : > { %p473_p3 = por %p472_p2, %p471_p1 }
  0x1f   : > { %p474_p5 = pnand %p473_p3, %p467_p0 }
  0xa9   : > { %v213_v4 = vpop.xlane.xlu0 %212 }
  0xaa   : > { %vm214_vm1 = vcmp.eq.f32.partialorder %v198_v0, %v213_v4 }
  0xab   : > { %v215_v5 = vsel %vm214_vm1, %v201_v3, 8 }
  0xac   : > { %v216_v6 = vsel %vm210_vm0, %v215_v5, 2147483647 }
  0xad   : > { %v218_v7 = vshra.s32 %v216_v6, 16  ;;  %v217_v10 = vand.u32 65535, %v216_v6 }
  0xaf   : > { %v220_v8 = vcvt.s32.f32 %v218_v7  ;;  %v219_v12 = vcvt.s32.f32 %v217_v10 }
  0xb1   : > { %221 = vmin.xlane.f32.xlu0 %v220_v8 }
 0x13e   : > { %v222_v11 = vpop.xlane.xlu0 %221 }
 0x13f   : > { %vm223_vm2 = vcmp.eq.f32.partialorder %v220_v8, %v222_v11  ;;  %v228_v16 = vcvt.f32.s32 %v222_v11 }
 0x140   : > { %v224_v13 = vsel %vm223_vm2, %v219_v12, inf }
 0x141   : > { %225 = vmin.xlane.f32.xlu1 %v224_v13  ;;  %v229_v18 = vshll.u32 %v228_v16, 16 }
 0x152   : > { %236 = vperm.xlu1 %460, %v199_v14  }
 0x1ce   : > { %v226_v17 = vpop.xlane.xlu1 %225 }
 0x1cf   : > { %v227_v19 = vcvt.f32.s32 %v226_v17 }
 0x1d1   : > { %v230_v20 = vadd.s32 %v229_v18, %v227_v19 }
 0x1d2   : > { %v237_v21 = vpop.permute.xlu1 %236 }
 0x1d3   : > { %vm231_vm4 = vcmp.eq.s32.totalorder %v201_v3, %v230_v20  ;;  %vm238_vm5 = vcmp.eq.s32.totalorder %v201_v3, %v237_v21 }
 0x1d4   : > { %v397_v22 = vsel %vm231_vm4, 1.0, %v545_v15  ;;  %v398_v23 = vsel %vm238_vm5, 1.0, %v545_v15 }
 0x1d5   : > { %v255_v24 = vsel %vm210_vm0, %v397_v22, 0.0  ;;  %v243_v25 = vmul.f32 %v398_v23, %v397_v22  ;;  %v265_v26 = vsel %vm210_vm0, %v398_v23, 0.0 }
 0x1d6   : > { %v256_v27 = vrot.slane %v255_v24, 4  ;;  %v266_v28 = vrot.slane %v265_v26, 4 }
 0x1d7   : > { %v244_v29 = vsel %vm210_vm0, %v243_v25, 0.0 }
 0x1d8   : > { %v257_v30 = vadd.f32 %v256_v27, %v255_v24  ;;  %v245_v31 = vrot.slane %v244_v29, 4  ;;  %v267_v32 = vadd.f32 %v266_v28, %v265_v26 }
 0x1da   : > { %v258_v33 = vrot.slane %v257_v30, 2  ;;  %v246_v34 = vadd.f32 %v245_v31, %v244_v29  ;;  %v268_v35 = vrot.slane %v267_v32, 2 }
 0x1dc   : > { %v259_v36 = vadd.f32 %v258_v33, %v257_v30  ;;  %v247_v37 = vrot.slane %v246_v34, 2  ;;  %v269_v38 = vadd.f32 %v268_v35, %v267_v32 }
 0x1de   : > { %v260_v39 = vrot.slane %v259_v36, 1  ;;  %v248_v40 = vadd.f32 %v247_v37, %v246_v34  ;;  %v270_v41 = vrot.slane %v269_v38, 1 }
 0x1e0   : > { %v261_v44 = vadd.f32 %v260_v39, %v259_v36  ;;  %v249_v45 = vrot.slane %v248_v40, 1  ;;  %v271_v46 = vadd.f32 %v270_v41, %v269_v38 }
 0x1e2   : > { %v262_v48 = vadd.f32 %v261_v44, %v254_v42  ;;  %v250_v49 = vadd.f32 %v249_v45, %v248_v40  ;;  %v272_v50 = vadd.f32 %v271_v46, %v264_v43 }
 0x1e4   : > { %263 = vst.msk [vmem:[#allocation3] sm:$0x1] %vm194_vm3, %v262_v48  ;;  %v251_v51 = vadd.f32 %v250_v49, %v242_v47  ;;  %273 = vst.msk [vmem:[#allocation4] sm:$0x1] %vm194_vm3, %v272_v50 }
 0x1e6   : > { %253 = vst.msk [vmem:[#allocation2] sm:$0x1] %vm194_vm3, %v251_v51 }
 0x1eb   : > { %v278_v52 = vld [vmem:[#allocation3] sm:$0x1]  ;;  %v279_v53 = vld [vmem:[#allocation4] sm:$0x1] }
 0x1ec   : > { %v288_v54 = vld [vmem:[#allocation4] sm:$0x1]  ;;  %v280_v55 = vadd.f32 %v279_v53, %v278_v52 }
 0x1ed   : > { %289 = vst.msk [vmem:[%s175_s5 + $0x1] sm:$0x1] %vm194_vm3, %v288_v54  ;;  %v277_v57 = vld [vmem:[#allocation2] sm:$0x1] }
 0x1ee   : > { %vm281_vm6 = vcmp.eq.f32.partialorder %v280_v55, 0.0  ;;  %v282_v58 = vmul.f32 2.0, %v277_v57 }
 0x1ef   : > { %v283_v56 = vsel %vm281_vm6, 1.0, %v280_v55 }
 0x1f0   : > { %462 = vrcp.f32 %v283_v56 }
 0x1fa   : > { %v463_v59 = vpop.eup %462 }
 0x1fb   : > { %v285_v60 = vmul.f32 %v463_v59, %v282_v58 }
 0x1fd   : > { %v286_v61 = vsel %vm281_vm6, 1.0, %v285_v60 }
 0x1fe   : > { %287 = vst.msk [vmem:[%s175_s5] sm:$0x1] %vm194_vm3, %v286_v61 }
 0x1ff   : > { %477 = shalt.err (!%p474_p5)
}
 0x200   : > { %s478_s25 = scalar_lea.hbm %s642_s16, 32  ;;  %s482_s28 = scalar_lea.hbm %s692_s2, 64 }
 0x201   : > { %p479_p6 = scmp.ne.s32.totalorder %s642_s16, %s478_s25  ;;  %p483_p10 = scmp.lt.u32.totalorder %s642_s16, %s692_s2 }
 0x202   : > { %p484_p11 = scmp.lt.u32.totalorder %s482_s28, %s478_s25  ;;  %p486_p13 = scmp.lt.u32.totalorder %s478_s25, %s642_s16 }
 0x203   : > { %p480_p7 = pnand %p479_p6, %p602_p4 }
 0x204   : > { %p485_p12 = por %p484_p11, %p483_p10 }
 0x205   : > { %p481_p9 = pneg %p480_p7 }
 0x206   : > { %p487_p0 = por %p486_p13, %p485_p12 }
 0x208   : > { %p488_p1 = pnand %p487_p0, %p481_p9 }
 0x20a   : > { %491 = shalt.err (!%p488_p1)
}
 0x20b   : > { %403 = dma.vmem_to_hbm [thread:$0]  (%p602_p4), %s644_s7, 32, %s642_s16, %s291_s18  }
 0x20c PF: > { %p409_p2 = scmp.ge.s32.totalorder %s542_s14, 2  ;;  %s316_s3 = sand.u32 1, %s522_s9  }
 0x20d   : > { %s317_s4 = scalar_lea.sflag [#allocation6], %s316_s3 }
 0x20e   : > { %p406_p3 = pnand %p409_p2, %p609_p8 }
 0x210   : > { %517 = dma.done.wait (!%p406_p3), %s317_s4, 32  }
 0x211   : > { %519 = vsyncadd (!%p406_p3), %s317_s4, 4294967264  ;;  %s15_s14 = sadd.s32 1, %s542_s14   ;;  %s695_s9 = smov %s526_s10 }
 0x212   : > { %p12_p5 = scmp.ge.s32.totalorder %s15_s14, 4   ;;  %s696_s10 = smov %s530_s11 }
 0x213   : > { %s697_s11 = smov %s615_s22  ;;  %s698_s12 = smov %s538_s13 }
 0x214   : > { %s699_s13 = smov %s701_s17  ;;  %14 = sbr.rel (!%p12_p5) target bundleno = 4 (0x4), region = 74 }
 0x21b   :  { %322 = vsyncpa [#allocation6], 1 }
 0x21c   :  { %324 = vsyncpa [#allocation6 + $0x1], 1 }

</bundles_post_ra>
